<compile_context>
chip_gen: v5e
topology: v5e:2x2
jax: 0.10.0
libtpu: 0.0.40
codegen_flags: <defaults>
</compile_context>

<pallas_src>
import math

import jax
import jax.numpy as jnp
from jax.experimental import pallas as pl
from jax.experimental.pallas import tpu as pltpu

# ----------------------------- model config ---------------------------------
EMBED_DIM = 32
NUM_HEADS = 4
DEPTH = 2
MLP_RATIO = 4
HEAD_DIM = EMBED_DIM // NUM_HEADS          # 8
HIDDEN = MLP_RATIO * EMBED_DIM             # 128
BATCH = 2
SEQ = 8
TOKENS = BATCH * SEQ                       # 16
EPS = 1e-5
LANES = 128

# ------------------- packed per-layer weight slab layout --------------------
# One (PACK_ROWS, 128) f32 slab per layer; everything lane-padded with zeros.
R_WQKV = 0                                 # rows   0: 32, lanes 0:96 (Q pre-scaled)
R_WO = R_WQKV + EMBED_DIM                  # rows  32: 64, lanes 0:32
R_W1 = R_WO + EMBED_DIM                    # rows  64: 96, lanes 0:128
R_W2 = R_W1 + EMBED_DIM                    # rows  96:224, lanes 0:32
R_VEC = R_W2 + HIDDEN                      # 224
R_LN1G = R_VEC + 0
R_LN1B = R_VEC + 1
R_BQKV = R_VEC + 2                         # lanes 0:96 (Q part pre-scaled)
R_BO = R_VEC + 3
R_LN2G = R_VEC + 4
R_LN2B = R_VEC + 5
R_B1 = R_VEC + 6                           # lanes 0:128
R_B2 = R_VEC + 7
PACK_ROWS = R_VEC + 8                      # 232 (multiple of 8)


def _layer_norm(x, gamma, beta):
    # x: (N, D); gamma/beta: (1, D)
    mean = jnp.mean(x, axis=-1, keepdims=True)
    var = jnp.mean((x - mean) ** 2, axis=-1, keepdims=True)
    return (x - mean) * jax.lax.rsqrt(var + EPS) * gamma + beta


# ------------------------------ Pallas kernel --------------------------------
def decoder_kernel(x_ref, w_ref, out_ref):
    # x_ref / out_ref: (TOKENS, D).  w_ref: (PACK_ROWS, 128) (depth axis squeezed).
    d = pl.program_id(0)

    # Load the input only on the first layer; afterwards the hidden state is
    # carried in the resident VMEM output block (same block index every step).
    @pl.when(d == 0)
    def _():
        out_ref[...] = x_ref[...]

    x = out_ref[...].astype(jnp.float32)                     # (TOKENS, D)

    def vec(r, width=EMBED_DIM):
        return w_ref[r:r + 1, :width]                        # (1, width)

    # ----- self-attention (pre-norm) -----
    xn = _layer_norm(x, vec(R_LN1G), vec(R_LN1B))
    # Fused QKV projection, full 128 lanes (lanes 96:128 are zero padding);
    # the softmax scale is already folded into the Q columns.
    qkv = jnp.dot(xn, w_ref[R_WQKV:R_WQKV + EMBED_DIM, :],
                  preferred_element_type=jnp.float32) + vec(R_BQKV, LANES)
    qkv = qkv.reshape(BATCH, SEQ, LANES)                     # leading-dim split only

    attn = jnp.zeros((TOKENS, EMBED_DIM), jnp.float32)
    for h in range(NUM_HEADS):                               # static unroll, B-batched
        q = qkv[:, :, h * HEAD_DIM:(h + 1) * HEAD_DIM]                         # (B,S,hd)
        k = qkv[:, :, EMBED_DIM + h * HEAD_DIM:EMBED_DIM + (h + 1) * HEAD_DIM]
        v = qkv[:, :, 2 * EMBED_DIM + h * HEAD_DIM:2 * EMBED_DIM + (h + 1) * HEAD_DIM]
        s = jnp.einsum('bqd,bkd->bqk', q, k,
                       preferred_element_type=jnp.float32)                     # (B,S,S)
        s = s - jnp.max(s, axis=-1, keepdims=True)
        p = jnp.exp(s)
        p = p * pl.reciprocal(jnp.sum(p, axis=-1, keepdims=True), approx=True)
        o = jnp.einsum('bqk,bkd->bqd', p, v,
                       preferred_element_type=jnp.float32)                     # (B,S,hd)
        # Fold this head's slice of the output projection (no lane concat).
        attn = attn + jnp.dot(
            o.reshape(TOKENS, HEAD_DIM),
            w_ref[R_WO + h * HEAD_DIM:R_WO + (h + 1) * HEAD_DIM, :EMBED_DIM],
            preferred_element_type=jnp.float32)
    h1 = x + attn + vec(R_BO)                                # residual 1 (dropout = id)

    # ----- MLP (pre-norm) -----
    hn = _layer_norm(h1, vec(R_LN2G), vec(R_LN2B))
    z = jnp.dot(hn, w_ref[R_W1:R_W1 + EMBED_DIM, :],
                preferred_element_type=jnp.float32) + vec(R_B1, HIDDEN)        # (N,128)
    z = jax.nn.gelu(z, approximate=True)
    y = jnp.dot(z, w_ref[R_W2:R_W2 + HIDDEN, :EMBED_DIM],
                preferred_element_type=jnp.float32) + vec(R_B2)

    out_ref[...] = (h1 + y).astype(out_ref.dtype)            # residual 2


# ------------------------------ wrappers --------------------------------------
def pack_params(block_params):
    """Pack the 13 per-layer tensors into one (DEPTH, PACK_ROWS, 128) slab."""
    scale = 1.0 / math.sqrt(HEAD_DIM)
    packs = []
    for p in block_params:
        wqkv = p["wqkv"].at[:, :EMBED_DIM].multiply(scale)   # fold softmax scale into Q
        bqkv = p["bqkv"][0].at[:EMBED_DIM].multiply(scale)
        w = jnp.zeros((PACK_ROWS, LANES), jnp.float32)
        w = w.at[R_WQKV:R_WQKV + EMBED_DIM, :3 * EMBED_DIM].set(wqkv)
        w = w.at[R_WO:R_WO + EMBED_DIM, :EMBED_DIM].set(p["wo"])
        w = w.at[R_W1:R_W1 + EMBED_DIM, :HIDDEN].set(p["w1"])
        w = w.at[R_W2:R_W2 + HIDDEN, :EMBED_DIM].set(p["w2"])
        w = w.at[R_LN1G, :EMBED_DIM].set(p["ln1_g"][0])
        w = w.at[R_LN1B, :EMBED_DIM].set(p["ln1_b"][0])
        w = w.at[R_BQKV, :3 * EMBED_DIM].set(bqkv)
        w = w.at[R_BO, :EMBED_DIM].set(p["bo"][0])
        w = w.at[R_LN2G, :EMBED_DIM].set(p["ln2_g"][0])
        w = w.at[R_LN2B, :EMBED_DIM].set(p["ln2_b"][0])
        w = w.at[R_B1, :HIDDEN].set(p["b1"][0])
        w = w.at[R_B2, :EMBED_DIM].set(p["b2"][0])
        packs.append(w)
    return jnp.stack(packs, axis=0)


def decoder_forward(x, w_pack):
    """Decoder.forward: all `depth` transformer blocks in one pallas_call."""
    B, S, D = x.shape
    depth = w_pack.shape[0]
    x2 = x.reshape(B * S, D)
    out = pl.pallas_call(
        decoder_kernel,
        out_shape=jax.ShapeDtypeStruct((B * S, D), x.dtype),
        grid=(depth,),
        in_specs=[
            pl.BlockSpec((B * S, D), lambda d: (0, 0)),                 # resident
            pl.BlockSpec((None, PACK_ROWS, LANES), lambda d: (d, 0, 0)),  # 1 DMA/layer
        ],
        out_specs=pl.BlockSpec((B * S, D), lambda d: (0, 0)),           # hidden carrier
        compiler_params=pltpu.CompilerParams(
            dimension_semantics=("arbitrary",)),
    )(x2, w_pack)
    return out.reshape(B, S, D)


# ----------------------- deterministic parameter init ------------------------
def init_block_params(key, D=EMBED_DIM, ratio=MLP_RATIO):
    H = ratio * D
    keys = jax.random.split(key, 6)
    s = 0.02
    return {
        "ln1_g": jnp.ones((1, D), jnp.float32),
        "ln1_b": jnp.zeros((1, D), jnp.float32),
        "wqkv": s * jax.random.normal(keys[0], (D, 3 * D), jnp.float32),
        "bqkv": s * jax.random.normal(keys[1], (1, 3 * D), jnp.float32),
        "wo":   s * jax.random.normal(keys[2], (D, D), jnp.float32),
        "bo":   jnp.zeros((1, D), jnp.float32),
        "ln2_g": jnp.ones((1, D), jnp.float32),
        "ln2_b": jnp.zeros((1, D), jnp.float32),
        "w1":   s * jax.random.normal(keys[3], (D, H), jnp.float32),
        "b1":   s * jax.random.normal(keys[4], (1, H), jnp.float32),
        "w2":   s * jax.random.normal(keys[5], (H, D), jnp.float32),
        "b2":   jnp.zeros((1, D), jnp.float32),
    }


# ------------------------------ pure-JAX reference ----------------------------
def _ref_block(x, p):
    def ln(v, g, b):
        m = jnp.mean(v, axis=-1, keepdims=True)
        var = jnp.mean((v - m) ** 2, axis=-1, keepdims=True)
        return (v - m) * jax.lax.rsqrt(var + EPS) * g + b

    B, S, D = x.shape
    xn = ln(x, p["ln1_g"], p["ln1_b"])
    qkv = xn @ p["wqkv"] + p["bqkv"]                     # (B, S, 3D)
    q, k, v = jnp.split(qkv, 3, axis=-1)
    q = q.reshape(B, S, NUM_HEADS, HEAD_DIM)
    k = k.reshape(B, S, NUM_HEADS, HEAD_DIM)
    v = v.reshape(B, S, NUM_HEADS, HEAD_DIM)
    s = jnp.einsum("bqhd,bkhd->bhqk", q, k) / math.sqrt(HEAD_DIM)
    p_attn = jax.nn.softmax(s, axis=-1)
    o = jnp.einsum("bhqk,bkhd->bqhd", p_attn, v).reshape(B, S, D)
    h1 = x + o @ p["wo"] + p["bo"]
    hn = ln(h1, p["ln2_g"], p["ln2_b"])
    z = jax.nn.gelu(hn @ p["w1"] + p["b1"], approximate=True) @ p["w2"] + p["b2"]
    return h1 + z


def _ref_decoder(x, block_params):
    for p in block_params:
        x = _ref_block(x, p)
    return x


# --------------------------------- main ---------------------------------------
if __name__ == "__main__":
    key = jax.random.PRNGKey(0)
    kx, *kblocks = jax.random.split(key, DEPTH + 1)

    # hidden_states: (B, S, D)
    x = jax.random.normal(kx, (BATCH, SEQ, EMBED_DIM), jnp.float32)
    block_params = [init_block_params(k) for k in kblocks]
    w_pack = pack_params(block_params)

    out = decoder_forward(x, w_pack)
    out = jax.block_until_ready(out)

    ref = _ref_decoder(x, block_params)
    assert out.shape == (BATCH, SEQ, EMBED_DIM)
    assert jnp.allclose(out, ref, rtol=1e-3, atol=1e-3), "mismatch vs JAX reference"

    print("KERNEL_OK")
</pallas_src>

<mosaic_0001>
module attributes {stable_mosaic.version = 11 : i64} {
  func.func @decoder_kernel(%arg0: i32, %arg1: memref<16x32xf32, #tpu.memory_space<vmem>>, %arg2: memref<1x232x128xf32, #tpu.memory_space<vmem>>, %arg3: memref<16x32xf32, #tpu.memory_space<vmem>>) attributes {dimension_semantics = [#tpu.dimension_semantics<arbitrary>], iteration_bounds = array<i64: 2>, scalar_prefetch = 0 : i64, scratch_operands = 0 : i64, tpu.core_type = #tpu.core_type<tc>, window_params = [{pipeline_mode = #tpu.pipeline_mode<synchronous>, transform_indices = @transform_0, window_bounds = array<i64: 16, 32>}, {transform_indices = @transform_1, window_bounds = array<i64: 1, 232, 128>}, {pipeline_mode = #tpu.pipeline_mode<synchronous>, transform_indices = @transform_2, window_bounds = array<i64: 16, 32>}]} {
    %c0_i32 = arith.constant 0 : i32
    %0 = arith.cmpi eq, %arg0, %c0_i32 : i32
    %1 = arith.extui %0 : i1 to i32
    %c0_i32_0 = arith.constant 0 : i32
    %2 = arith.cmpi ne, %1, %c0_i32_0 : i32
    scf.if %2 {
      %c0_72 = arith.constant 0 : index
      %c0_73 = arith.constant 0 : index
      %179 = vector.load %arg1[%c0_72, %c0_73] : memref<16x32xf32, #tpu.memory_space<vmem>>, vector<16x32xf32>
      %c0_74 = arith.constant 0 : index
      %c0_75 = arith.constant 0 : index
      %180 = vector.load %arg3[%c0_74, %c0_75] : memref<16x32xf32, #tpu.memory_space<vmem>>, vector<16x32xf32>
      tpu.vector_store %arg3[%c0_74, %c0_75], %179 {strides = array<i32>} : memref<16x32xf32, #tpu.memory_space<vmem>>, vector<16x32xf32>,
    } else {
    }
    %c0 = arith.constant 0 : index
    %c0_1 = arith.constant 0 : index
    %3 = vector.load %arg3[%c0, %c0_1] : memref<16x32xf32, #tpu.memory_space<vmem>>, vector<16x32xf32>
    %c0_2 = arith.constant 0 : index
    %c224 = arith.constant 224 : index
    %c0_3 = arith.constant 0 : index
    %4 = vector.load %arg2[%c0_2, %c224, %c0_3] : memref<1x232x128xf32, #tpu.memory_space<vmem>>, vector<1x1x32xf32>
    %5 = vector.shape_cast %4 : vector<1x1x32xf32> to vector<1x32xf32>
    %c0_4 = arith.constant 0 : index
    %c225 = arith.constant 225 : index
    %c0_5 = arith.constant 0 : index
    %6 = vector.load %arg2[%c0_4, %c225, %c0_5] : memref<1x232x128xf32, #tpu.memory_space<vmem>>, vector<1x1x32xf32>
    %7 = vector.shape_cast %6 : vector<1x1x32xf32> to vector<1x32xf32>
    %cst = arith.constant dense<0.000000e+00> : vector<16xf32>
    %8 = vector.multi_reduction <add>, %3, %cst [1] : vector<16x32xf32> to vector<16xf32>
    %9 = vector.shape_cast %8 : vector<16xf32> to vector<16x1xf32>
    %cst_6 = arith.constant 3.200000e+01 : f32
    %10 = vector.broadcast %cst_6 : f32 to vector<16x1xf32>
    %11 = arith.divf %9, %10 : vector<16x1xf32>
    %12 = vector.broadcast %11 : vector<16x1xf32> to vector<16x32xf32>
    %13 = arith.subf %3, %12 : vector<16x32xf32>
    %14 = arith.mulf %13, %13 : vector<16x32xf32>
    %cst_7 = arith.constant dense<0.000000e+00> : vector<16xf32>
    %15 = vector.multi_reduction <add>, %14, %cst_7 [1] : vector<16x32xf32> to vector<16xf32>
    %16 = vector.shape_cast %15 : vector<16xf32> to vector<16x1xf32>
    %cst_8 = arith.constant 3.200000e+01 : f32
    %17 = vector.broadcast %cst_8 : f32 to vector<16x1xf32>
    %18 = arith.divf %16, %17 : vector<16x1xf32>
    %19 = vector.broadcast %11 : vector<16x1xf32> to vector<16x32xf32>
    %20 = arith.subf %3, %19 : vector<16x32xf32>
    %cst_9 = arith.constant 9.99999974E-6 : f32
    %21 = vector.broadcast %cst_9 : f32 to vector<16x1xf32>
    %22 = arith.addf %18, %21 : vector<16x1xf32>
    %23 = math.rsqrt %22 : vector<16x1xf32>
    %24 = vector.broadcast %23 : vector<16x1xf32> to vector<16x32xf32>
    %25 = arith.mulf %20, %24 : vector<16x32xf32>
    %26 = vector.broadcast %5 : vector<1x32xf32> to vector<16x32xf32>
    %27 = arith.mulf %25, %26 : vector<16x32xf32>
    %28 = vector.broadcast %7 : vector<1x32xf32> to vector<16x32xf32>
    %29 = arith.addf %27, %28 : vector<16x32xf32>
    %c0_10 = arith.constant 0 : index
    %c0_11 = arith.constant 0 : index
    %c0_12 = arith.constant 0 : index
    %30 = vector.load %arg2[%c0_10, %c0_11, %c0_12] : memref<1x232x128xf32, #tpu.memory_space<vmem>>, vector<1x32x128xf32>
    %31 = vector.shape_cast %30 : vector<1x32x128xf32> to vector<32x128xf32>
    %cst_13 = arith.constant dense<0.000000e+00> : vector<16x128xf32>
    %32 = tpu.matmul %29, %31, %cst_13 {dimension_numbers = #tpu.dot_dimension_numbers<[1], [0], [0], [1], [0, 0, 1, 1], [], []>} : vector<16x32xf32>, vector<32x128xf32>, vector<16x128xf32> -> vector<16x128xf32>
    %c0_14 = arith.constant 0 : index
    %c226 = arith.constant 226 : index
    %c0_15 = arith.constant 0 : index
    %33 = vector.load %arg2[%c0_14, %c226, %c0_15] : memref<1x232x128xf32, #tpu.memory_space<vmem>>, vector<1x1x128xf32>
    %34 = vector.shape_cast %33 : vector<1x1x128xf32> to vector<1x128xf32>
    %35 = vector.broadcast %34 : vector<1x128xf32> to vector<16x128xf32>
    %36 = arith.addf %32, %35 : vector<16x128xf32>
    %37 = vector.shape_cast %36 : vector<16x128xf32> to vector<2x8x128xf32>
    %cst_16 = arith.constant 0.000000e+00 : f32
    %38 = vector.broadcast %cst_16 : f32 to vector<16x32xf32>
    %39 = vector.extract_strided_slice %37 {offsets = [0, 0, 0], sizes = [2, 8, 8], strides = [1, 1, 1]} : vector<2x8x128xf32> to vector<2x8x8xf32>
    %40 = vector.extract_strided_slice %37 {offsets = [0, 0, 32], sizes = [2, 8, 8], strides = [1, 1, 1]} : vector<2x8x128xf32> to vector<2x8x8xf32>
    %41 = vector.extract_strided_slice %37 {offsets = [0, 0, 64], sizes = [2, 8, 8], strides = [1, 1, 1]} : vector<2x8x128xf32> to vector<2x8x8xf32>
    "tpu.trace_start"() <{level = 10 : i32, message = "bqd,bkd->bqk"}> : () -> ()
    %cst_17 = arith.constant dense<0.000000e+00> : vector<2x8x8xf32>
    %42 = tpu.matmul %39, %40, %cst_17 {dimension_numbers = #tpu.dot_dimension_numbers<[2], [2], [1], [1], [0, 0, 0, 1, 1, 1], [0], [0]>} : vector<2x8x8xf32>, vector<2x8x8xf32>, vector<2x8x8xf32> -> vector<2x8x8xf32>
    "tpu.trace_stop"() : () -> ()
    %cst_18 = arith.constant dense<0xFF800000> : vector<2x8xf32>
    %43 = vector.multi_reduction <maximumf>, %42, %cst_18 [2] : vector<2x8x8xf32> to vector<2x8xf32>
    %44 = vector.shape_cast %43 : vector<2x8xf32> to vector<2x8x1xf32>
    %45 = vector.broadcast %44 : vector<2x8x1xf32> to vector<2x8x8xf32>
    %46 = arith.subf %42, %45 : vector<2x8x8xf32>
    %47 = math.exp %46 : vector<2x8x8xf32>
    %cst_19 = arith.constant dense<0.000000e+00> : vector<2x8xf32>
    %48 = vector.multi_reduction <add>, %47, %cst_19 [2] : vector<2x8x8xf32> to vector<2x8xf32>
    %49 = vector.shape_cast %48 : vector<2x8xf32> to vector<2x8x1xf32>
    %50 = tpu.reciprocal %49 {approx = true} : vector<2x8x1xf32> -> vector<2x8x1xf32>
    %51 = vector.broadcast %50 : vector<2x8x1xf32> to vector<2x8x8xf32>
    %52 = arith.mulf %47, %51 : vector<2x8x8xf32>
    "tpu.trace_start"() <{level = 10 : i32, message = "bqk,bkd->bqd"}> : () -> ()
    %cst_20 = arith.constant dense<0.000000e+00> : vector<2x8x8xf32>
    %53 = tpu.matmul %52, %41, %cst_20 {dimension_numbers = #tpu.dot_dimension_numbers<[2], [1], [1], [2], [0, 0, 0, 1, 1, 2], [0], [0]>} : vector<2x8x8xf32>, vector<2x8x8xf32>, vector<2x8x8xf32> -> vector<2x8x8xf32>
    "tpu.trace_stop"() : () -> ()
    %54 = vector.shape_cast %53 : vector<2x8x8xf32> to vector<16x8xf32>
    %c0_21 = arith.constant 0 : index
    %c32 = arith.constant 32 : index
    %c0_22 = arith.constant 0 : index
    %55 = vector.load %arg2[%c0_21, %c32, %c0_22] : memref<1x232x128xf32, #tpu.memory_space<vmem>>, vector<1x8x32xf32>
    %56 = vector.shape_cast %55 : vector<1x8x32xf32> to vector<8x32xf32>
    %cst_23 = arith.constant dense<0.000000e+00> : vector<16x32xf32>
    %57 = tpu.matmul %54, %56, %cst_23 {dimension_numbers = #tpu.dot_dimension_numbers<[1], [0], [0], [1], [0, 0, 1, 1], [], []>} : vector<16x8xf32>, vector<8x32xf32>, vector<16x32xf32> -> vector<16x32xf32>
    %58 = arith.addf %38, %57 : vector<16x32xf32>
    %59 = vector.extract_strided_slice %37 {offsets = [0, 0, 8], sizes = [2, 8, 8], strides = [1, 1, 1]} : vector<2x8x128xf32> to vector<2x8x8xf32>
    %60 = vector.extract_strided_slice %37 {offsets = [0, 0, 40], sizes = [2, 8, 8], strides = [1, 1, 1]} : vector<2x8x128xf32> to vector<2x8x8xf32>
    %61 = vector.extract_strided_slice %37 {offsets = [0, 0, 72], sizes = [2, 8, 8], strides = [1, 1, 1]} : vector<2x8x128xf32> to vector<2x8x8xf32>
    "tpu.trace_start"() <{level = 10 : i32, message = "bqd,bkd->bqk"}> : () -> ()
    %cst_24 = arith.constant dense<0.000000e+00> : vector<2x8x8xf32>
    %62 = tpu.matmul %59, %60, %cst_24 {dimension_numbers = #tpu.dot_dimension_numbers<[2], [2], [1], [1], [0, 0, 0, 1, 1, 1], [0], [0]>} : vector<2x8x8xf32>, vector<2x8x8xf32>, vector<2x8x8xf32> -> vector<2x8x8xf32>
    "tpu.trace_stop"() : () -> ()
    %cst_25 = arith.constant dense<0xFF800000> : vector<2x8xf32>
    %63 = vector.multi_reduction <maximumf>, %62, %cst_25 [2] : vector<2x8x8xf32> to vector<2x8xf32>
    %64 = vector.shape_cast %63 : vector<2x8xf32> to vector<2x8x1xf32>
    %65 = vector.broadcast %64 : vector<2x8x1xf32> to vector<2x8x8xf32>
    %66 = arith.subf %62, %65 : vector<2x8x8xf32>
    %67 = math.exp %66 : vector<2x8x8xf32>
    %cst_26 = arith.constant dense<0.000000e+00> : vector<2x8xf32>
    %68 = vector.multi_reduction <add>, %67, %cst_26 [2] : vector<2x8x8xf32> to vector<2x8xf32>
    %69 = vector.shape_cast %68 : vector<2x8xf32> to vector<2x8x1xf32>
    %70 = tpu.reciprocal %69 {approx = true} : vector<2x8x1xf32> -> vector<2x8x1xf32>
    %71 = vector.broadcast %70 : vector<2x8x1xf32> to vector<2x8x8xf32>
    %72 = arith.mulf %67, %71 : vector<2x8x8xf32>
    "tpu.trace_start"() <{level = 10 : i32, message = "bqk,bkd->bqd"}> : () -> ()
    %cst_27 = arith.constant dense<0.000000e+00> : vector<2x8x8xf32>
    %73 = tpu.matmul %72, %61, %cst_27 {dimension_numbers = #tpu.dot_dimension_numbers<[2], [1], [1], [2], [0, 0, 0, 1, 1, 2], [0], [0]>} : vector<2x8x8xf32>, vector<2x8x8xf32>, vector<2x8x8xf32> -> vector<2x8x8xf32>
    "tpu.trace_stop"() : () -> ()
    %74 = vector.shape_cast %73 : vector<2x8x8xf32> to vector<16x8xf32>
    %c0_28 = arith.constant 0 : index
    %c40 = arith.constant 40 : index
    %c0_29 = arith.constant 0 : index
    %75 = vector.load %arg2[%c0_28, %c40, %c0_29] : memref<1x232x128xf32, #tpu.memory_space<vmem>>, vector<1x8x32xf32>
    %76 = vector.shape_cast %75 : vector<1x8x32xf32> to vector<8x32xf32>
    %cst_30 = arith.constant dense<0.000000e+00> : vector<16x32xf32>
    %77 = tpu.matmul %74, %76, %cst_30 {dimension_numbers = #tpu.dot_dimension_numbers<[1], [0], [0], [1], [0, 0, 1, 1], [], []>} : vector<16x8xf32>, vector<8x32xf32>, vector<16x32xf32> -> vector<16x32xf32>
    %78 = arith.addf %58, %77 : vector<16x32xf32>
    %79 = vector.extract_strided_slice %37 {offsets = [0, 0, 16], sizes = [2, 8, 8], strides = [1, 1, 1]} : vector<2x8x128xf32> to vector<2x8x8xf32>
    %80 = vector.extract_strided_slice %37 {offsets = [0, 0, 48], sizes = [2, 8, 8], strides = [1, 1, 1]} : vector<2x8x128xf32> to vector<2x8x8xf32>
    %81 = vector.extract_strided_slice %37 {offsets = [0, 0, 80], sizes = [2, 8, 8], strides = [1, 1, 1]} : vector<2x8x128xf32> to vector<2x8x8xf32>
    "tpu.trace_start"() <{level = 10 : i32, message = "bqd,bkd->bqk"}> : () -> ()
    %cst_31 = arith.constant dense<0.000000e+00> : vector<2x8x8xf32>
    %82 = tpu.matmul %79, %80, %cst_31 {dimension_numbers = #tpu.dot_dimension_numbers<[2], [2], [1], [1], [0, 0, 0, 1, 1, 1], [0], [0]>} : vector<2x8x8xf32>, vector<2x8x8xf32>, vector<2x8x8xf32> -> vector<2x8x8xf32>
    "tpu.trace_stop"() : () -> ()
    %cst_32 = arith.constant dense<0xFF800000> : vector<2x8xf32>
    %83 = vector.multi_reduction <maximumf>, %82, %cst_32 [2] : vector<2x8x8xf32> to vector<2x8xf32>
    %84 = vector.shape_cast %83 : vector<2x8xf32> to vector<2x8x1xf32>
    %85 = vector.broadcast %84 : vector<2x8x1xf32> to vector<2x8x8xf32>
    %86 = arith.subf %82, %85 : vector<2x8x8xf32>
    %87 = math.exp %86 : vector<2x8x8xf32>
    %cst_33 = arith.constant dense<0.000000e+00> : vector<2x8xf32>
    %88 = vector.multi_reduction <add>, %87, %cst_33 [2] : vector<2x8x8xf32> to vector<2x8xf32>
    %89 = vector.shape_cast %88 : vector<2x8xf32> to vector<2x8x1xf32>
    %90 = tpu.reciprocal %89 {approx = true} : vector<2x8x1xf32> -> vector<2x8x1xf32>
    %91 = vector.broadcast %90 : vector<2x8x1xf32> to vector<2x8x8xf32>
    %92 = arith.mulf %87, %91 : vector<2x8x8xf32>
    "tpu.trace_start"() <{level = 10 : i32, message = "bqk,bkd->bqd"}> : () -> ()
    %cst_34 = arith.constant dense<0.000000e+00> : vector<2x8x8xf32>
    %93 = tpu.matmul %92, %81, %cst_34 {dimension_numbers = #tpu.dot_dimension_numbers<[2], [1], [1], [2], [0, 0, 0, 1, 1, 2], [0], [0]>} : vector<2x8x8xf32>, vector<2x8x8xf32>, vector<2x8x8xf32> -> vector<2x8x8xf32>
    "tpu.trace_stop"() : () -> ()
    %94 = vector.shape_cast %93 : vector<2x8x8xf32> to vector<16x8xf32>
    %c0_35 = arith.constant 0 : index
    %c48 = arith.constant 48 : index
    %c0_36 = arith.constant 0 : index
    %95 = vector.load %arg2[%c0_35, %c48, %c0_36] : memref<1x232x128xf32, #tpu.memory_space<vmem>>, vector<1x8x32xf32>
    %96 = vector.shape_cast %95 : vector<1x8x32xf32> to vector<8x32xf32>
    %cst_37 = arith.constant dense<0.000000e+00> : vector<16x32xf32>
    %97 = tpu.matmul %94, %96, %cst_37 {dimension_numbers = #tpu.dot_dimension_numbers<[1], [0], [0], [1], [0, 0, 1, 1], [], []>} : vector<16x8xf32>, vector<8x32xf32>, vector<16x32xf32> -> vector<16x32xf32>
    %98 = arith.addf %78, %97 : vector<16x32xf32>
    %99 = vector.extract_strided_slice %37 {offsets = [0, 0, 24], sizes = [2, 8, 8], strides = [1, 1, 1]} : vector<2x8x128xf32> to vector<2x8x8xf32>
    %100 = vector.extract_strided_slice %37 {offsets = [0, 0, 56], sizes = [2, 8, 8], strides = [1, 1, 1]} : vector<2x8x128xf32> to vector<2x8x8xf32>
    %101 = vector.extract_strided_slice %37 {offsets = [0, 0, 88], sizes = [2, 8, 8], strides = [1, 1, 1]} : vector<2x8x128xf32> to vector<2x8x8xf32>
    "tpu.trace_start"() <{level = 10 : i32, message = "bqd,bkd->bqk"}> : () -> ()
    %cst_38 = arith.constant dense<0.000000e+00> : vector<2x8x8xf32>
    %102 = tpu.matmul %99, %100, %cst_38 {dimension_numbers = #tpu.dot_dimension_numbers<[2], [2], [1], [1], [0, 0, 0, 1, 1, 1], [0], [0]>} : vector<2x8x8xf32>, vector<2x8x8xf32>, vector<2x8x8xf32> -> vector<2x8x8xf32>
    "tpu.trace_stop"() : () -> ()
    %cst_39 = arith.constant dense<0xFF800000> : vector<2x8xf32>
    %103 = vector.multi_reduction <maximumf>, %102, %cst_39 [2] : vector<2x8x8xf32> to vector<2x8xf32>
    %104 = vector.shape_cast %103 : vector<2x8xf32> to vector<2x8x1xf32>
    %105 = vector.broadcast %104 : vector<2x8x1xf32> to vector<2x8x8xf32>
    %106 = arith.subf %102, %105 : vector<2x8x8xf32>
    %107 = math.exp %106 : vector<2x8x8xf32>
    %cst_40 = arith.constant dense<0.000000e+00> : vector<2x8xf32>
    %108 = vector.multi_reduction <add>, %107, %cst_40 [2] : vector<2x8x8xf32> to vector<2x8xf32>
    %109 = vector.shape_cast %108 : vector<2x8xf32> to vector<2x8x1xf32>
    %110 = tpu.reciprocal %109 {approx = true} : vector<2x8x1xf32> -> vector<2x8x1xf32>
    %111 = vector.broadcast %110 : vector<2x8x1xf32> to vector<2x8x8xf32>
    %112 = arith.mulf %107, %111 : vector<2x8x8xf32>
    "tpu.trace_start"() <{level = 10 : i32, message = "bqk,bkd->bqd"}> : () -> ()
    %cst_41 = arith.constant dense<0.000000e+00> : vector<2x8x8xf32>
    %113 = tpu.matmul %112, %101, %cst_41 {dimension_numbers = #tpu.dot_dimension_numbers<[2], [1], [1], [2], [0, 0, 0, 1, 1, 2], [0], [0]>} : vector<2x8x8xf32>, vector<2x8x8xf32>, vector<2x8x8xf32> -> vector<2x8x8xf32>
    "tpu.trace_stop"() : () -> ()
    %114 = vector.shape_cast %113 : vector<2x8x8xf32> to vector<16x8xf32>
    %c0_42 = arith.constant 0 : index
    %c56 = arith.constant 56 : index
    %c0_43 = arith.constant 0 : index
    %115 = vector.load %arg2[%c0_42, %c56, %c0_43] : memref<1x232x128xf32, #tpu.memory_space<vmem>>, vector<1x8x32xf32>
    %116 = vector.shape_cast %115 : vector<1x8x32xf32> to vector<8x32xf32>
    %cst_44 = arith.constant dense<0.000000e+00> : vector<16x32xf32>
    %117 = tpu.matmul %114, %116, %cst_44 {dimension_numbers = #tpu.dot_dimension_numbers<[1], [0], [0], [1], [0, 0, 1, 1], [], []>} : vector<16x8xf32>, vector<8x32xf32>, vector<16x32xf32> -> vector<16x32xf32>
    %118 = arith.addf %98, %117 : vector<16x32xf32>
    %119 = arith.addf %3, %118 : vector<16x32xf32>
    %c0_45 = arith.constant 0 : index
    %c227 = arith.constant 227 : index
    %c0_46 = arith.constant 0 : index
    %120 = vector.load %arg2[%c0_45, %c227, %c0_46] : memref<1x232x128xf32, #tpu.memory_space<vmem>>, vector<1x1x32xf32>
    %121 = vector.shape_cast %120 : vector<1x1x32xf32> to vector<1x32xf32>
    %122 = vector.broadcast %121 : vector<1x32xf32> to vector<16x32xf32>
    %123 = arith.addf %119, %122 : vector<16x32xf32>
    %c0_47 = arith.constant 0 : index
    %c228 = arith.constant 228 : index
    %c0_48 = arith.constant 0 : index
    %124 = vector.load %arg2[%c0_47, %c228, %c0_48] : memref<1x232x128xf32, #tpu.memory_space<vmem>>, vector<1x1x32xf32>
    %125 = vector.shape_cast %124 : vector<1x1x32xf32> to vector<1x32xf32>
    %c0_49 = arith.constant 0 : index
    %c229 = arith.constant 229 : index
    %c0_50 = arith.constant 0 : index
    %126 = vector.load %arg2[%c0_49, %c229, %c0_50] : memref<1x232x128xf32, #tpu.memory_space<vmem>>, vector<1x1x32xf32>
    %127 = vector.shape_cast %126 : vector<1x1x32xf32> to vector<1x32xf32>
    %cst_51 = arith.constant dense<0.000000e+00> : vector<16xf32>
    %128 = vector.multi_reduction <add>, %123, %cst_51 [1] : vector<16x32xf32> to vector<16xf32>
    %129 = vector.shape_cast %128 : vector<16xf32> to vector<16x1xf32>
    %cst_52 = arith.constant 3.200000e+01 : f32
    %130 = vector.broadcast %cst_52 : f32 to vector<16x1xf32>
    %131 = arith.divf %129, %130 : vector<16x1xf32>
    %132 = vector.broadcast %131 : vector<16x1xf32> to vector<16x32xf32>
    %133 = arith.subf %123, %132 : vector<16x32xf32>
    %134 = arith.mulf %133, %133 : vector<16x32xf32>
    %cst_53 = arith.constant dense<0.000000e+00> : vector<16xf32>
    %135 = vector.multi_reduction <add>, %134, %cst_53 [1] : vector<16x32xf32> to vector<16xf32>
    %136 = vector.shape_cast %135 : vector<16xf32> to vector<16x1xf32>
    %cst_54 = arith.constant 3.200000e+01 : f32
    %137 = vector.broadcast %cst_54 : f32 to vector<16x1xf32>
    %138 = arith.divf %136, %137 : vector<16x1xf32>
    %139 = vector.broadcast %131 : vector<16x1xf32> to vector<16x32xf32>
    %140 = arith.subf %123, %139 : vector<16x32xf32>
    %cst_55 = arith.constant 9.99999974E-6 : f32
    %141 = vector.broadcast %cst_55 : f32 to vector<16x1xf32>
    %142 = arith.addf %138, %141 : vector<16x1xf32>
    %143 = math.rsqrt %142 : vector<16x1xf32>
    %144 = vector.broadcast %143 : vector<16x1xf32> to vector<16x32xf32>
    %145 = arith.mulf %140, %144 : vector<16x32xf32>
    %146 = vector.broadcast %125 : vector<1x32xf32> to vector<16x32xf32>
    %147 = arith.mulf %145, %146 : vector<16x32xf32>
    %148 = vector.broadcast %127 : vector<1x32xf32> to vector<16x32xf32>
    %149 = arith.addf %147, %148 : vector<16x32xf32>
    %c0_56 = arith.constant 0 : index
    %c64 = arith.constant 64 : index
    %c0_57 = arith.constant 0 : index
    %150 = vector.load %arg2[%c0_56, %c64, %c0_57] : memref<1x232x128xf32, #tpu.memory_space<vmem>>, vector<1x32x128xf32>
    %151 = vector.shape_cast %150 : vector<1x32x128xf32> to vector<32x128xf32>
    %cst_58 = arith.constant dense<0.000000e+00> : vector<16x128xf32>
    %152 = tpu.matmul %149, %151, %cst_58 {dimension_numbers = #tpu.dot_dimension_numbers<[1], [0], [0], [1], [0, 0, 1, 1], [], []>} : vector<16x32xf32>, vector<32x128xf32>, vector<16x128xf32> -> vector<16x128xf32>
    %c0_59 = arith.constant 0 : index
    %c230 = arith.constant 230 : index
    %c0_60 = arith.constant 0 : index
    %153 = vector.load %arg2[%c0_59, %c230, %c0_60] : memref<1x232x128xf32, #tpu.memory_space<vmem>>, vector<1x1x128xf32>
    %154 = vector.shape_cast %153 : vector<1x1x128xf32> to vector<1x128xf32>
    %155 = vector.broadcast %154 : vector<1x128xf32> to vector<16x128xf32>
    %156 = arith.addf %152, %155 : vector<16x128xf32>
    %157 = arith.mulf %156, %156 : vector<16x128xf32>
    %158 = arith.mulf %156, %157 : vector<16x128xf32>
    %cst_61 = arith.constant 4.471500e-02 : f32
    %159 = vector.broadcast %cst_61 : f32 to vector<16x128xf32>
    %160 = arith.mulf %159, %158 : vector<16x128xf32>
    %161 = arith.addf %156, %160 : vector<16x128xf32>
    %cst_62 = arith.constant 0.797884583 : f32
    %162 = vector.broadcast %cst_62 : f32 to vector<16x128xf32>
    %163 = arith.mulf %162, %161 : vector<16x128xf32>
    %164 = math.tanh %163 : vector<16x128xf32>
    %cst_63 = arith.constant 1.000000e+00 : f32
    %165 = vector.broadcast %cst_63 : f32 to vector<16x128xf32>
    %166 = arith.addf %165, %164 : vector<16x128xf32>
    %cst_64 = arith.constant 5.000000e-01 : f32
    %167 = vector.broadcast %cst_64 : f32 to vector<16x128xf32>
    %168 = arith.mulf %167, %166 : vector<16x128xf32>
    %169 = arith.mulf %156, %168 : vector<16x128xf32>
    %c0_65 = arith.constant 0 : index
    %c96 = arith.constant 96 : index
    %c0_66 = arith.constant 0 : index
    %170 = vector.load %arg2[%c0_65, %c96, %c0_66] : memref<1x232x128xf32, #tpu.memory_space<vmem>>, vector<1x128x32xf32>
    %171 = vector.shape_cast %170 : vector<1x128x32xf32> to vector<128x32xf32>
    %cst_67 = arith.constant dense<0.000000e+00> : vector<16x32xf32>
    %172 = tpu.matmul %169, %171, %cst_67 {dimension_numbers = #tpu.dot_dimension_numbers<[1], [0], [0], [1], [0, 0, 1, 1], [], []>} : vector<16x128xf32>, vector<128x32xf32>, vector<16x32xf32> -> vector<16x32xf32>
    %c0_68 = arith.constant 0 : index
    %c231 = arith.constant 231 : index
    %c0_69 = arith.constant 0 : index
    %173 = vector.load %arg2[%c0_68, %c231, %c0_69] : memref<1x232x128xf32, #tpu.memory_space<vmem>>, vector<1x1x32xf32>
    %174 = vector.shape_cast %173 : vector<1x1x32xf32> to vector<1x32xf32>
    %175 = vector.broadcast %174 : vector<1x32xf32> to vector<16x32xf32>
    %176 = arith.addf %172, %175 : vector<16x32xf32>
    %177 = arith.addf %123, %176 : vector<16x32xf32>
    %c0_70 = arith.constant 0 : index
    %c0_71 = arith.constant 0 : index
    %178 = vector.load %arg3[%c0_70, %c0_71] : memref<16x32xf32, #tpu.memory_space<vmem>>, vector<16x32xf32>
    tpu.vector_store %arg3[%c0_70, %c0_71], %177 {strides = array<i32>} : memref<16x32xf32, #tpu.memory_space<vmem>>, vector<16x32xf32>,
    return
  }
  func.func @transform_0(%arg0: i32) -> (i32, i32) {
    %c0_i32 = arith.constant 0 : i32
    %c0_i32_0 = arith.constant 0 : i32
    %c0_i32_1 = arith.constant 0 : i32
    return %c0_i32, %c0_i32_0 : i32, i32
  }
  func.func @transform_1(%arg0: i32) -> (i32, i32, i32) {
    %c0_i32 = arith.constant 0 : i32
    %c0_i32_0 = arith.constant 0 : i32
    %c0_i32_1 = arith.constant 0 : i32
    return %arg0, %c0_i32, %c0_i32_0 : i32, i32, i32
  }
  func.func @transform_2(%arg0: i32) -> (i32, i32) {
    %c0_i32 = arith.constant 0 : i32
    %c0_i32_0 = arith.constant 0 : i32
    %c0_i32_1 = arith.constant 0 : i32
    return %c0_i32, %c0_i32_0 : i32, i32
  }
}

</mosaic_0001>

<bundles_post_ra>
// kernel: tpu_custom_call.1
= control target key start
LH: loop header
LB: loop body
LE: loop exit
PB: predicated region body
PF: predicated region fallthrough
CT: control target
= control target key end

     0   :  { %7 = vsyncpa [#allocation3], 0  ;;  %s1772_s0 = inlined_call_operand.hbm [shape: f32[16,32], index: 0, kind: input, shape index: {}]   ;;  %s1773_s1 = inlined_call_operand.hbm [shape: f32[2,232,128], index: 1, kind: input, shape index: {}]   ;;  %s1774_s2 = inlined_call_operand.hbm [shape: f32[16,32], index: 2, kind: output, shape index: {}]  }
   0x1   :  { %8 = vsyncpa [#allocation6], 0 }
   0x2   :  { %10 = vsyncpa [#allocation6 + $0x1], 0 }
   0x3   :  { %11 = vsyncpa [#allocation4], 0  ;;  %s1490_s9 = smov 0   ;;  %s1492_s10 = smov 0  }
   0x4   :  { %s1494_s11 = smov 0   ;;  %s1496_s12 = smov 0  }
   0x5 LB: > { %s1509_s13 = sadd.s32 4294967295, %s1455_s12   ;;  %p58_p0 = scmp.ne.s32.totalorder %s1447_s10, %s1443_s9  ;;  %s1455_s12 = sphi %s1496_s12, %s1781_s12   ;;  %s1451_s11 = sphi %s1494_s11, %s1780_s11   ;;  %s1447_s10 = sphi %s1492_s10, %s1779_s10   ;;  %s1443_s9 = sphi %s1490_s9, %s1778_s9  }
   0x6   : > { %p59_p1 = scmp.eq.s32.totalorder %s1509_s13, 0  ;;  %p1148_p2 = scmp.ge.s32.totalorder %s1455_s12, 1 }
   0x7   : > { %p90_p3 = scmp.lt.s32.totalorder %s1455_s12, 3  ;;  %p1149_p4 = scmp.ne.s32.totalorder %s1509_s13, 0 }
   0x8   : > { %p1518_p5 = por %p59_p1, %p58_p0  ;;  %s101_s17 = sshll.u32 %s1772_s0, 4  ;;  %s102_s17 = int_to_ptr.hbm [resolvable:$true] %s101_s17 }
   0x9   : > { %p1525_p6 = pnand %p1148_p2, %p90_p3  ;;  %s1457_s19 = smov [#allocation2]  }
   0xa   : > { %s103_s20 = sshll.u32 %s1457_s19, 4  ;;  %s1534_s21 = sadd.s32 1, %s1455_s12   ;;  %s104_s20 = int_to_ptr.vmem [resolvable:$true] %s103_s20 }
   0xb   : > { %p1208_p7 = pneg %p1525_p6  ;;  %s1458_s22 = smov 128  }
   0xc   : > { %s1459_s23 = smov 8   ;;  %s42_s24 = ssub.s32 %s1455_s12, %s1534_s21 }
   0xd   : > { %p1209_p8 = pnand %p1208_p7, %p59_p1  ;;  %s45_s25 = sadd.s32 1, %s1451_s11 }
   0xe   : > { %p43_p9 = scmp.eq.s32.totalorder %s42_s24, 0  ;;  %p52_p10 = scmp.ne.s32.totalorder %s1451_s11, %s1447_s10 }
   0xf   : > { %1211 = dma.hbm_to_vmem [thread:$0]  (!%p1209_p8), %s102_s17, 256, %s104_s20, [#allocation3], %s1458_s22, %s1458_s22, %s1459_s23  }
  0x10   : > { %p53_p11 = scmp.eq.s32.totalorder %s1455_s12, 0  ;;  %p1217_p12 = scmp.lt.s32.totalorder %s1455_s12, 2 }
  0x11   : > { %s1547_s26 = scalar_select %p43_p9, %s1451_s11, %s45_s25  }
  0x12   : > { %p54_p13 = por %p53_p11, %p52_p10  ;;  %s117_s27 = sand.u32 1, %s1451_s11  }
  0x13   : > { %s1195_s28 = smul.u32 232, %s117_s27  ;;  %s118_s9 = scalar_lea.sflag [#allocation6], %s117_s27 }
  0x14   : > { %s1196_s29 = smul.u32 232, %s1455_s12  ;;  %p1551_p0 = pnand %p1217_p12, %p54_p13 }
  0x15   : > { %s121_s6 = scalar_lea.vmem [#allocation5], %s1195_s28  ;;  %s1362_s19 = scalar_lea.hbm %s1773_s1, 464 }
  0x16   : > { %s126_s5 = scalar_lea.hbm %s1773_s1, %s1196_s29  ;;  %s129_s7 = sshll.u32 %s121_s6, 4  ;;  %s130_s7 = int_to_ptr.vmem [resolvable:$true] %s129_s7 }
  0x17   : > { %s127_s8 = sshll.u32 %s126_s5, 4  ;;  %p1359_p3 = pneg %p1551_p0  ;;  %s128_s8 = int_to_ptr.hbm [resolvable:$true] %s127_s8 }
  0x18   : > { %s1355_s15 = sshra.s32 %s128_s8, 4  ;;  %s1356_s15 = int_to_ptr.hbm [resolvable:$true] %s1355_s15 }
  0x19   : > { %s1357_s16 = scalar_lea.hbm %s1356_s15, 232  ;;  %p1363_p9 = scmp.lt.s32.totalorder %s1356_s15, %s1773_s1 }
  0x1a   : > { %p1358_p2 = scmp.ne.s32.totalorder %s1356_s15, %s1357_s16  ;;  %p1364_p10 = scmp.lt.s32.totalorder %s1362_s19, %s1357_s16 }
  0x1c   : > { %p1360_p7 = pnand %p1359_p3, %p1358_p2  ;;  %p1365_p11 = por %p1364_p10, %p1363_p9 }
  0x1e   : > { %p1361_p8 = pneg %p1360_p7 }
  0x20   : > { %p1366_p12 = pnand %p1365_p11, %p1361_p8 }
  0x22   : > { %1369 = shalt.err (!%p1366_p12)
}
  0x23   : > { %1215 = dma.hbm_to_vmem [thread:$0]  (!%p1551_p0), %s128_s8, 3712, %s130_s7, %s118_s9, %s1458_s22, %s1458_s22, %s1459_s23  }
  0x24   : > { %141 = sbr.rel (%p1525_p6) target bundleno = 2593 (0xa21), region = 28 }
  0x29   : > { %1430 = dma.done.wait (%p59_p1), [#allocation3], 256  }
  0x2a   : > { %1432 = vsyncadd (%p59_p1), [#allocation3], 4294967040  ;;  %s148_s25 = sand.u32 1, %s1447_s10  }
  0x2b   : > { %s1197_s27 = smul.u32 232, %s148_s25  ;;  %s149_s28 = scalar_lea.sflag [#allocation6], %s148_s25 }
  0x2d   : > { %s1578_s29 = scalar_lea.vmem [#allocation5], %s1197_s27 }
  0x2e   : > { %1434 = dma.done.wait (%p1518_p5), %s149_s28, 3712  }
  0x2f   : > { %1436 = vsyncadd (%p1518_p5), %s149_s28, 4294963584  ;;  %172 = sbr.rel (%p1149_p4) target bundleno = 55 (0x37), region = 40 }
  0x34   : > { %v173_v0 = vld [vmem:[#allocation2] sm:$0xff]  ;;  %vm175_vm0 = vcmask 261120   ;;  %v174_v1 = vld [vmem:[#allocation2 + $0x8] sm:$0xff] }
  0x35   : > { %176 = vst.msk [vmem:[#allocation7] sm:$0xff] %vm175_vm0, %v173_v0 }
  0x36   : > { %177 = vst.msk [vmem:[#allocation7 + $0x8] sm:$0xff] %vm175_vm0, %v174_v1 }
  0x37 PF: > { %vm182_vm1 = vcmask 261120   ;;  %v1460_v6 = vmov 32.0   ;;  %v243_v23 = vld [vmem:[%s1578_s29 + $0x18] sm:$0xff]  ;;  %v242_v24 = vld [vmem:[%s1578_s29 + $0x10] sm:$0xff]  ;;  %v241_v25 = vld [vmem:[%s1578_s29 + $0x8] sm:$0xff]  ;;  %s1461_s14 = smov 88  }
  0x38   : > { %1279 = vrcp.f32 %v1460_v6  ;;  %264 = vmatpush.msra.mxu0 %v243_v23  ;;  %v240_v26 = vld [vmem:[%s1578_s29] sm:$0xff]  ;;  %s1462_s18 = smov 96   ;;  %s1463_s22 = smov 120   ;;  %vm278_vm9 = vcmask 64512  }
  0x39   : > { %v1271_v41 = vld [vmem:[%s1578_s29 + $0xe0] ss:$0 sm:$0xff]  ;;  %v1272_v45 = vld [vmem:[%s1578_s29 + $0xe1] ss:$0 sm:$0xff]  ;;  %v1273_v55 = vld [vmem:[%s1578_s29 + $0xe2] ss:$0 sm:$0xff] }
  0x3a   : > { %265 = vmatpush.msra.mxu0 %v242_v24  ;;  %s1464_s23 = smov 64   ;;  %s1465_s30 = smov 80  }
  0x3b   : > { %s1466_s3 = smov 112   ;;  %s1467_s4 = smov 56  }
  0x3c   : > { %v1586_v2 = vld [vmem:[#allocation7] sm:$0xff]  ;;  %266 = vmatpush.msra.mxu0 %v241_v25  ;;  %s1468_s5 = smov 72   ;;  %s1469_s6 = smov 48  }
  0x3d   : > { %v183_v3 = vsel %vm182_vm1, %v1586_v2, 0.0  ;;  %v1590_v4 = vld [vmem:[#allocation7 + $0x8] sm:$0xff]  ;;  %s1470_s7 = smov 104   ;;  %s1471_s8 = smov 40  }
  0x3e   : > { %184 = vadd.xlane.f32.xlu0 %v183_v3  ;;  %v186_v5 = vsel %vm182_vm1, %v1590_v4, 0.0  ;;  %v1280_v7 = vpop.eup %1279  ;;  %267 = vmatpush.msra.mxu0 %v240_v26  ;;  %s1472_s9 = smov [#allocation7]   ;;  %s1081_s17 = sshll.u32 %s1774_s2, 4  ;;  %s1082_s17 = int_to_ptr.hbm [resolvable:$true] %s1081_s17 }
  0x3f   : > { %v190_v8 = vmul.f32 32.0, %v1280_v7  ;;  %vm194_vm2 = vweird.f32 %v1280_v7  ;;  %s1079_s15 = sshll.u32 %s1472_s9, 4  ;;  %p1219_p1 = scmp.eq.s32.totalorder %s1509_s13, 1  ;;  %s1080_s15 = int_to_ptr.vmem [resolvable:$true] %s1079_s15 }
  0x40   : > { %s1473_s19 = smov 128   ;;  %s1474_s20 = smov 8  }
  0x41   : > { %v191_v9 = vsub.f32 1.0, %v190_v8 }
  0x43   : > { %v192_v10 = vmul.f32 %v1280_v7, %v191_v9 }
  0x45   : > { %v193_v11 = vadd.f32 %v1280_v7, %v192_v10 }
  0x46   : > { %187 = vadd.xlane.f32.xlu0 %v186_v5 }
  0x47   : > { %v1594_v12 = vsel %vm194_vm2, %v1280_v7, %v193_v11 }
  0xb1   : > { %v185_v13 = vpop.xlane.xlu0 %184 }
  0xb2   : > { %v196_v14 = vmul.f32 %v1594_v12, %v185_v13 }
  0xb4   : > { %v198_v15 = vsub.f32 %v1586_v2, %v196_v14 }
  0xb6   : > { %v200_v16 = vmul.f32 %v198_v15, %v198_v15 }
  0xb8   : > { %v202_v17 = vsel %vm182_vm1, %v200_v16, 0.0 }
  0xb9   : > { %203 = vadd.xlane.f32.xlu1 %v202_v17  ;;  %v188_v18 = vpop.xlane.xlu0 %187 }
  0xba   : > { %v197_v19 = vmul.f32 %v1594_v12, %v188_v18 }
  0xbc   : > { %v199_v20 = vsub.f32 %v1590_v4, %v197_v19 }
  0xbe   : > { %v201_v21 = vmul.f32 %v199_v20, %v199_v20 }
  0xc0   : > { %v205_v22 = vsel %vm182_vm1, %v201_v21, 0.0 }
  0xc1   : > { %206 = vadd.xlane.f32.xlu1 %v205_v22 }
 0x12c   : > { %v204_v27 = vpop.xlane.xlu1 %203 }
 0x12d   : > { %v208_v28 = vmul.f32 %v204_v27, %v1594_v12 }
 0x12f   : > { %v210_v29 = vadd.f32 1e-05, %v208_v28 }
 0x131   : > { %1281 = vrsqrt.f32 %v210_v29  ;;  %vm218_vm4 = vweird.f32 %v210_v29 }
 0x134   : > { %v207_v30 = vpop.xlane.xlu1 %206 }
 0x135   : > { %v209_v31 = vmul.f32 %v207_v30, %v1594_v12 }
 0x137   : > { %v1282_v32 = vpop.eup %1281  ;;  %v211_v33 = vadd.f32 1e-05, %v209_v31 }
 0x138   : > { %v213_v34 = vmul.f32 %v1282_v32, %v210_v29  ;;  %vm219_vm3 = vweird.f32 %v1282_v32 }
 0x139   : > { %1283 = vrsqrt.f32 %v211_v33  ;;  %vm220_vm5 = vmor %vm218_vm4, %vm219_vm3  ;;  %vm228_vm6 = vweird.f32 %v211_v33 }
 0x13a   : > { %v214_v35 = vmul.f32 %v1282_v32, %v213_v34 }
 0x13c   : > { %v215_v36 = vmul.f32 0.5, %v214_v35 }
 0x13e   : > { %v216_v37 = vsub.f32 1.5, %v215_v36 }
 0x13f   : > { %v1284_v38 = vpop.eup %1283 }
 0x140   : > { %v217_v39 = vmul.f32 %v1282_v32, %v216_v37  ;;  %v223_v40 = vmul.f32 %v1284_v38, %v211_v33  ;;  %vm229_vm7 = vweird.f32 %v1284_v38 }
 0x141   : > { %vm230_vm8 = vmor %vm228_vm6, %vm229_vm7 }
 0x142   : > { %v221_v42 = vsel %vm220_vm5, %v1282_v32, %v217_v39  ;;  %v224_v43 = vmul.f32 %v1284_v38, %v223_v40 }
 0x143   : > { %v232_v44 = vmul.f32 %v221_v42, %v198_v15 }
 0x144   : > { %v225_v46 = vmul.f32 0.5, %v224_v43 }
 0x145   : > { %v235_v47 = vmul.f32 %v1271_v41, %v232_v44 }
 0x146   : > { %v226_v48 = vsub.f32 1.5, %v225_v46 }
 0x147   : > { %v238_v49 = vadd.f32 %v1272_v45, %v235_v47 }
 0x148   : > { %v227_v50 = vmul.f32 %v1284_v38, %v226_v48  ;;  %v535_v48 = vld [vmem:[%s1578_s29 + $0x28] sm:$0xff] }
 0x149   : > { %1155 = vmatmul.msk.f32.vlgmr.msra.gmra.mxu0 %vm182_vm1, %v238_v49 }
 0x14a   : > { %v231_v51 = vsel %vm230_vm8, %v1284_v38, %v227_v50  ;;  %557 = vmatpush.msrb.mxu0 %v535_v48 }
 0x14b   : > { %v233_v52 = vmul.f32 %v231_v51, %v199_v20 }
 0x14d   : > { %v236_v53 = vmul.f32 %v1271_v41, %v233_v52  ;;  %v404_v52 = vld [vmem:[%s1578_s29 + $0x20] sm:$0xff] }
 0x14e   : > { %586 = vmatpush.msra.mxu0 %v404_v52 }
 0x14f   : > { %v239_v54 = vadd.f32 %v1272_v45, %v236_v53 }
 0x151   : > { %1156 = vmatmul.msk.f32.gmra.mxu0 %vm182_vm1, %v239_v54 }
 0x1c6   : > { %v269_v56 = vpop.f32.mrf.mxu0 }
 0x1c7   : > { %v1613_v57 = vadd.f32 %v1273_v55, %v269_v56 }
 0x1c9   : > { %407 = vrot.lane.b32.xlu0 %v1613_v57, %s1461_s14  ;;  %276 = vrot.lane.b32.xlu2 %v1613_v57, %s1462_s18 }
 0x1ca   : > { %405 = vrot.lane.b32.xlu1 %v1613_v57, %s1463_s22 }
 0x1ce   : > { %v272_v58 = vpop.f32.mrf.mxu0 }
 0x1cf   : > { %v1618_v59 = vadd.f32 %v1273_v55, %v272_v58 }
 0x1d1   : > { %304 = vrot.lane.b32.xlu2 %v1618_v59, %s1462_s18 }
 0x1d9   : > { %435 = vrot.lane.b32.xlu2 %v1618_v59, %s1461_s14 }
 0x1e1   : > { %433 = vrot.lane.b32.xlu2 %v1618_v59, %s1463_s22 }
 0x223   : > { %v277_v60 = vpop.permute.xlu2 %276 }
 0x224   : > { %1157 = vmatpush.xpose.msk.msra.mxu1 %vm278_vm9, %v277_v60 }
 0x227   : > { %1158 = vmatmul.msk.f32.vlgmr.msra.gmra.mxu1 %vm278_vm9, %v1613_v57 }
 0x22b   : > { %v305_v61 = vpop.permute.xlu2 %304 }
 0x22c   : > { %1159 = vmatpush.xpose.msk.msra.mxu2 %vm278_vm9, %v305_v61 }
 0x22f   : > { %1160 = vmatmul.msk.f32.vlgmr.msra.gmra.mxu2 %vm278_vm9, %v1618_v59 }
 0x233   : > { %v436_v62 = vpop.permute.xlu2 %435 }
 0x234   : > { %1165 = vmatpush.xpose.msk.msrb.mxu2 %vm278_vm9, %v436_v62 }
 0x23b   : > { %v434_v63 = vpop.permute.xlu2 %433  ;;  %v408_v0 = vpop.permute.xlu0 %407 }
 0x23c   : > { %1163 = vmatpush.xpose.msk.msrb.mxu1 %vm278_vm9, %v408_v0  ;;  %1166 = vmatmul.msk.f32.vlgmr.msrb.gmra.mxu2 %vm278_vm9, %v434_v63  ;;  %v406_v1 = vpop.permute.xlu1 %405 }
 0x23f   : > { %1164 = vmatmul.msk.f32.vlgmr.msrb.gmra.mxu1 %vm278_vm9, %v406_v1 }
 0x2a4   : > { %v300_v3 = vpop.f32.mrf.mxu1 }
 0x2a5   : > { %v330_v5 = vsel %vm278_vm9, %v300_v3, -inf }
 0x2a6   : > { %331 = vmax.xlane.f32.xlu2 %v330_v5 }
 0x2b2   : > { %v327_v6 = vpop.f32.mrf.mxu2 }
 0x2b3   : > { %v333_v7 = vsel %vm278_vm9, %v327_v6, -inf }
 0x2b4   : > { %334 = vmax.xlane.f32.xlu0 %v333_v7 }
 0x2bc   : > { %v430_v8 = vpop.f32.mrf.mxu1 }
 0x2bd   : > { %v461_v9 = vsel %vm278_vm9, %v430_v8, -inf }
 0x2be   : > { %352 = vrot.lane.b32.xlu2 %v1613_v57, %s1464_s23  ;;  %462 = vmax.xlane.f32.xlu1 %v461_v9 }
 0x2bf   : > { %v458_v28 = vpop.f32.mrf.mxu2 }
 0x2c0   : > { %v464_v29 = vsel %vm278_vm9, %v458_v28, -inf }
 0x2c8   : > { %378 = vrot.lane.b32.xlu0 %v1618_v59, %s1464_s23 }
 0x319   : > { %v332_v10 = vpop.xlane.xlu2 %331 }
 0x31a   : > { %v336_v11 = vsub.f32 %v300_v3, %v332_v10 }
 0x31c   : > { %v338_v13 = vmul.f32 1.442695, %v336_v11 }
 0x31e   : > { %1285 = vpow2.f32 %v338_v13 }
 0x321   : > { %v353_v14 = vpop.permute.xlu2 %352 }
 0x322   : > { %373 = vmatpush.msra.mxu3 %v353_v14 }
 0x324   : > { %v1286_v15 = vpop.eup %1285 }
 0x325   : > { %v342_v16 = vsel %vm278_vm9, %v1286_v15, 0.0 }
 0x326   : > { %343 = vadd.xlane.f32.xlu2 %v342_v16 }
 0x327   : > { %v335_v17 = vpop.xlane.xlu0 %334 }
 0x328   : > { %v337_v18 = vsub.f32 %v327_v6, %v335_v17 }
 0x32a   : > { %v340_v19 = vmul.f32 1.442695, %v337_v18 }
 0x32c   : > { %1287 = vpow2.f32 %v340_v19 }
 0x331   : > { %v463_v20 = vpop.xlane.xlu1 %462 }
 0x332   : > { %v1288_v21 = vpop.eup %1287  ;;  %v467_v22 = vsub.f32 %v430_v8, %v463_v20 }
 0x333   : > { %v345_v23 = vsel %vm278_vm9, %v1288_v21, 0.0 }
 0x334   : > { %v469_v24 = vmul.f32 1.442695, %v467_v22  ;;  %346 = vadd.xlane.f32.xlu0 %v345_v23 }
 0x336   : > { %1289 = vpow2.f32 %v469_v24 }
 0x33a   : > { %v379_v25 = vpop.permute.xlu0 %378 }
 0x33b   : > { %399 = vmatpush.msrb.mxu3 %v379_v25 }
 0x33c   : > { %v1290_v26 = vpop.eup %1289 }
 0x33d   : > { %v473_v27 = vsel %vm278_vm9, %v1290_v26, 0.0 }
 0x33e   : > { %596 = vrot.lane.b32.xlu2 %v1613_v57, %s1465_s30  ;;  %474 = vadd.xlane.f32.xlu1 %v473_v27 }
 0x348   : > { %594 = vrot.lane.b32.xlu0 %v1613_v57, %s1466_s3 }
 0x357   : > { %483 = vrot.lane.b32.xlu1 %v1613_v57, %s1467_s4 }
 0x35f   : > { %509 = vrot.lane.b32.xlu1 %v1618_v59, %s1467_s4 }
 0x367   : > { %465 = vmax.xlane.f32.xlu2 %v464_v29 }
 0x37f   : > { %622 = vrot.lane.b32.xlu2 %v1618_v59, %s1466_s3 }
 0x399   : > { %v344_v30 = vpop.xlane.xlu2 %343 }
 0x39a   : > { %1291 = vrcp.f32 %v344_v30 }
 0x3a0   : > { %v1292_v31 = vpop.eup %1291 }
 0x3a1   : > { %v350_v32 = vmul.f32 %v1292_v31, %v1286_v15  ;;  %v597_v40 = vpop.permute.xlu2 %596 }
 0x3a3   : > { %1161 = vmatmul.msk.f32.vlgmr.msra.gmra.mxu3 %vm278_vm9, %v350_v32 }
 0x3a7   : > { %v347_v33 = vpop.xlane.xlu0 %346 }
 0x3a8   : > { %1293 = vrcp.f32 %v347_v33 }
 0x3ae   : > { %v1294_v34 = vpop.eup %1293 }
 0x3af   : > { %v351_v35 = vmul.f32 %v1294_v34, %v1288_v21 }
 0x3b1   : > { %1162 = vmatmul.msk.f32.vlgmr.msrb.gmra.mxu3 %vm278_vm9, %v351_v35  ;;  %v475_v36 = vpop.xlane.xlu1 %474 }
 0x3b2   : > { %1295 = vrcp.f32 %v475_v36 }
 0x3b8   : > { %v1296_v37 = vpop.eup %1295 }
 0x3b9   : > { %v481_v38 = vmul.f32 %v1296_v37, %v1290_v26  ;;  %v724_v26 = vld [vmem:[%s1578_s29 + $0x30] sm:$0xff] }
 0x3ba   : > { %v595_v42 = vpop.permute.xlu0 %594  ;;  %746 = vmatpush.msra.mxu2 %v724_v26 }
 0x3c9   : > { %v484_v39 = vpop.permute.xlu1 %483 }
 0x3ca   : > { %504 = vmatpush.msra.mxu3 %v484_v39 }
 0x3cb   : > { %1167 = vmatmul.msk.f32.vlgmr.msra.gmra.mxu3 %vm278_vm9, %v481_v38 }
 0x3cc   : > { %1173 = vmatpush.xpose.msk.msrb.mxu3 %vm278_vm9, %v597_v40 }
 0x3d1   : > { %v510_v41 = vpop.permute.xlu1 %509 }
 0x3d2   : > { %530 = vmatpush.msra.mxu1 %v510_v41 }
 0x3d3   : > { %1174 = vmatmul.msk.f32.vlgmr.msrb.gmra.mxu3 %vm278_vm9, %v595_v42 }
 0x3da   : > { %v466_v43 = vpop.xlane.xlu2 %465 }
 0x3db   : > { %v468_v44 = vsub.f32 %v458_v28, %v466_v43 }
 0x3dd   : > { %v471_v45 = vmul.f32 1.442695, %v468_v44 }
 0x3df   : > { %1297 = vpow2.f32 %v471_v45 }
 0x3e2   : > { %v623_v61 = vpop.permute.xlu2 %622 }
 0x3e5   : > { %v1298_v46 = vpop.eup %1297 }
 0x3e6   : > { %v476_v47 = vsel %vm278_vm9, %v1298_v46, 0.0 }
 0x3e7   : > { %477 = vadd.xlane.f32.xlu0 %v476_v47 }
 0x3fb   : > { %624 = vrot.lane.b32.xlu0 %v1618_v59, %s1465_s30 }
 0x403   : > { %758 = vrot.lane.b32.xlu0 %v1613_v57, %s1468_s5 }
 0x40b   : > { %786 = vrot.lane.b32.xlu0 %v1618_v59, %s1468_s5 }
 0x426   : > { %v375_v49 = vpop.f32.mrf.mxu3 }
 0x434   : > { %v401_v50 = vpop.f32.mrf.mxu3 }
 0x44e   : > { %v506_v51 = vpop.f32.mrf.mxu3 }
 0x44f   : > { %1169 = vmatmul.msk.f32.vlgmr.msrb.gmra.mxu0 %vm278_vm9, %v506_v51 }
 0x456   : > { %v619_v53 = vpop.f32.mrf.mxu3 }
 0x457   : > { %v650_v54 = vsel %vm278_vm9, %v619_v53, -inf }
 0x458   : > { %651 = vmax.xlane.f32.xlu1 %v650_v54 }
 0x45a   : > { %v478_v55 = vpop.xlane.xlu0 %477 }
 0x45b   : > { %1299 = vrcp.f32 %v478_v55 }
 0x461   : > { %v1300_v56 = vpop.eup %1299 }
 0x462   : > { %v482_v58 = vmul.f32 %v1300_v56, %v1298_v46 }
 0x464   : > { %1168 = vmatmul.msk.f32.vlgmr.msra.gmra.mxu1 %vm278_vm9, %v482_v58 }
 0x46d   : > { %v625_v60 = vpop.permute.xlu0 %624 }
 0x46e   : > { %1175 = vmatpush.xpose.msk.msrb.mxu1 %vm278_vm9, %v625_v60 }
 0x471   : > { %672 = vrot.lane.b32.xlu1 %v1613_v57, %s1469_s6  ;;  %1176 = vmatmul.msk.f32.vlgmr.msrb.gmra.mxu1 %vm278_vm9, %v623_v61 }
 0x475   : > { %v759_v62 = vpop.permute.xlu0 %758 }
 0x476   : > { %1181 = vmatpush.xpose.msk.msrb.mxu0 %vm278_vm9, %v759_v62 }
 0x479   : > { %784 = vrot.lane.b32.xlu1 %v1618_v59, %s1470_s7 }
 0x47d   : > { %v787_v8 = vpop.permute.xlu0 %786 }
 0x4cb   : > { %v652_v63 = vpop.xlane.xlu1 %651 }
 0x4cc   : > { %v656_v0 = vsub.f32 %v619_v53, %v652_v63  ;;  %v559_v16 = vpop.f32.mrf.mxu0  ;;  %v1274_v63 = vld [vmem:[%s1578_s29 + $0xe3] ss:$0 sm:$0xff] }
 0x4ce   : > { %v658_v1 = vmul.f32 1.442695, %v656_v0 }
 0x4d0   : > { %1301 = vpow2.f32 %v658_v1 }
 0x4d6   : > { %v1302_v3 = vpop.eup %1301 }
 0x4d7   : > { %v662_v5 = vsel %vm278_vm9, %v1302_v3, 0.0 }
 0x4d8   : > { %663 = vadd.xlane.f32.xlu2 %v662_v5 }
 0x4e1   : > { %v532_v6 = vpop.f32.mrf.mxu1 }
 0x4e2   : > { %1170 = vmatmul.msk.f32.gmra.mxu0 %vm278_vm9, %v532_v6 }
 0x4e3   : > { %v673_v7 = vpop.permute.xlu1 %672 }
 0x4e4   : > { %693 = vmatpush.msra.mxu3 %v673_v7 }
 0x4e6   : > { %1183 = vmatpush.xpose.msk.msrb.mxu3 %vm278_vm9, %v787_v8 }
 0x4ea   : > { %1171 = vmatmul.msk.f32.vlgmr.msra.gmra.mxu0 %vm278_vm9, %v375_v49 }
 0x4eb   : > { %v785_v17 = vpop.permute.xlu1 %784 }
 0x4ee   : > { %v647_v9 = vpop.f32.mrf.mxu1 }
 0x4ef   : > { %v653_v10 = vsel %vm278_vm9, %v647_v9, -inf }
 0x4f0   : > { %756 = vrot.lane.b32.xlu2 %v1613_v57, %s1470_s7  ;;  %654 = vmax.xlane.f32.xlu0 %v653_v10 }
 0x4f2   : > { %1172 = vmatmul.msk.f32.gmra.mxu0 %vm278_vm9, %v401_v50 }
 0x54b   : > { %v664_v11 = vpop.xlane.xlu2 %663 }
 0x54c   : > { %1303 = vrcp.f32 %v664_v11 }
 0x552   : > { %v1304_v13 = vpop.eup %1303 }
 0x553   : > { %v670_v14 = vmul.f32 %v1304_v13, %v1302_v3  ;;  %v757_v15 = vpop.permute.xlu2 %756 }
 0x554   : > { %1182 = vmatmul.msk.f32.vlgmr.msrb.gmra.mxu0 %vm278_vm9, %v757_v15 }
 0x555   : > { %1177 = vmatmul.msk.f32.vlgmr.msra.gmra.mxu3 %vm278_vm9, %v670_v14 }
 0x55d   : > { %1184 = vmatmul.msk.f32.vlgmr.msrb.gmra.mxu3 %vm278_vm9, %v785_v17 }
 0x55f   : > { %v1679_v18 = vpop.f32.mrf.mxu0 }
 0x563   : > { %v655_v19 = vpop.xlane.xlu0 %654 }
 0x564   : > { %v657_v20 = vsub.f32 %v647_v9, %v655_v19 }
 0x566   : > { %v660_v21 = vmul.f32 1.442695, %v657_v20 }
 0x567   : > { %v588_v22 = vpop.f32.mrf.mxu0 }
 0x568   : > { %1305 = vpow2.f32 %v660_v21  ;;  %v1681_v23 = vadd.f32 %v588_v22, %v559_v16  ;;  %v979_v22 = vld [vmem:[%s1578_s29 + $0x58] sm:$0xff] }
 0x56e   : > { %v1306_v24 = vpop.eup %1305 }
 0x56f   : > { %v665_v25 = vsel %vm278_vm9, %v1306_v24, 0.0  ;;  %v1685_v27 = vpop.f32.mrf.mxu0 }
 0x570   : > { %666 = vadd.xlane.f32.xlu0 %v665_v25  ;;  %v592_v6 = vadd.f32 %v1685_v27, %v1679_v18  ;;  %v976_v25 = vld [vmem:[%s1578_s29 + $0x40] sm:$0xff] }
 0x5d1   : > { %v781_v28 = vpop.f32.mrf.mxu0 }
 0x5d2   : > { %v812_v29 = vsel %vm278_vm9, %v781_v28, -inf }
 0x5d3   : > { %813 = vmax.xlane.f32.xlu2 %v812_v29 }
 0x5d8   : > { %v695_v30 = vpop.f32.mrf.mxu3 }
 0x5d9   : > { %1179 = vmatmul.msk.f32.vlgmr.msra.gmra.mxu2 %vm278_vm9, %v695_v30 }
 0x5e0   : > { %v809_v31 = vpop.f32.mrf.mxu3 }
 0x5e1   : > { %v815_v32 = vsel %vm278_vm9, %v809_v31, -inf }
 0x5e2   : > { %816 = vmax.xlane.f32.xlu1 %v815_v32 }
 0x5e3   : > { %v667_v42 = vpop.xlane.xlu0 %666 }
 0x5fb   : > { %698 = vrot.lane.b32.xlu1 %v1618_v59, %s1469_s6 }
 0x646   : > { %v814_v33 = vpop.xlane.xlu2 %813 }
 0x647   : > { %v818_v34 = vsub.f32 %v781_v28, %v814_v33 }
 0x649   : > { %v820_v35 = vmul.f32 1.442695, %v818_v34 }
 0x64b   : > { %1307 = vpow2.f32 %v820_v35  ;;  %v1275_v35 = vld [vmem:[%s1578_s29 + $0xe4] ss:$0 sm:$0xff] }
 0x651   : > { %v1308_v36 = vpop.eup %1307 }
 0x652   : > { %v824_v37 = vsel %vm278_vm9, %v1308_v36, 0.0 }
 0x653   : > { %825 = vadd.xlane.f32.xlu2 %v824_v37 }
 0x655   : > { %v817_v38 = vpop.xlane.xlu1 %816 }
 0x656   : > { %v819_v39 = vsub.f32 %v809_v31, %v817_v38  ;;  %v1276_v38 = vld [vmem:[%s1578_s29 + $0xe5] ss:$0 sm:$0xff] }
 0x658   : > { %v822_v40 = vmul.f32 1.442695, %v819_v39  ;;  %v1044_v39 = vld [vmem:[%s1578_s29 + $0xd8] sm:$0xff] }
 0x659   : > { %1047 = vmatpush.msrb.mxu2 %v1044_v39 }
 0x65a   : > { %1309 = vpow2.f32 %v822_v40  ;;  %v1043_v40 = vld [vmem:[%s1578_s29 + $0xd0] sm:$0xff] }
 0x65b   : > { %1311 = vrcp.f32 %v667_v42  ;;  %v1042_v42 = vld [vmem:[%s1578_s29 + $0xc8] sm:$0xff]  ;;  %1048 = vmatpush.msrb.mxu2 %v1043_v40 }
 0x65c   : > { %v748_v58 = vpop.f32.mrf.mxu2 }
 0x65d   : > { %v754_v60 = vadd.f32 %v748_v58, %v1681_v23  ;;  %v978_v23 = vld [vmem:[%s1578_s29 + $0x50] sm:$0xff]  ;;  %1049 = vmatpush.msrb.mxu2 %v1042_v42  ;;  %v1038_v58 = vld [vmem:[%s1578_s29 + $0xa8] sm:$0xff] }
 0x660   : > { %v1310_v41 = vpop.eup %1309 }
 0x661   : > { %v827_v43 = vsel %vm278_vm9, %v1310_v41, 0.0  ;;  %v1312_v44 = vpop.eup %1311 }
 0x662   : > { %828 = vadd.xlane.f32.xlu0 %v827_v43  ;;  %v671_v45 = vmul.f32 %v1312_v44, %v1306_v24  ;;  %v977_v24 = vld [vmem:[%s1578_s29 + $0x48] sm:$0xff] }
 0x66b   : > { %834 = vrot.lane.b32.xlu2 %v1613_v57, %s1471_s8 }
 0x66d   : > { %v699_v46 = vpop.permute.xlu1 %698 }
 0x66e   : > { %719 = vmatpush.msra.mxu1 %v699_v46 }
 0x66f   : > { %1178 = vmatmul.msk.f32.vlgmr.msra.gmra.mxu1 %vm278_vm9, %v671_v45 }
 0x676   : > { %860 = vrot.lane.b32.xlu0 %v1618_v59, %s1471_s8  ;;  %v886_v59 = vld [vmem:[%s1578_s29 + $0x38] sm:$0xff] }
 0x677   : > { %908 = vmatpush.msra.mxu3 %v886_v59  ;;  %v1041_v59 = vld [vmem:[%s1578_s29 + $0xc0] sm:$0xff] }
 0x678   : > { %1050 = vmatpush.msrb.mxu2 %v1041_v59 }
 0x6c6   : > { %v826_v47 = vpop.xlane.xlu2 %825 }
 0x6c7   : > { %1313 = vrcp.f32 %v826_v47 }
 0x6cd   : > { %v1314_v48 = vpop.eup %1313 }
 0x6ce   : > { %v832_v49 = vmul.f32 %v1314_v48, %v1308_v36  ;;  %v835_v50 = vpop.permute.xlu2 %834 }
 0x6cf   : > { %855 = vmatpush.msrb.mxu1 %v835_v50 }
 0x6d0   : > { %1185 = vmatmul.msk.f32.vlgmr.msrb.gmra.mxu1 %vm278_vm9, %v832_v49 }
 0x6d1   : > { %1000 = vmatpush.msra.mxu1 %v979_v22 }
 0x6d3   : > { %1001 = vmatpush.msra.mxu1 %v978_v23 }
 0x6d5   : > { %v829_v51 = vpop.xlane.xlu0 %828  ;;  %1002 = vmatpush.msra.mxu1 %v977_v24 }
 0x6d6   : > { %1315 = vrcp.f32 %v829_v51 }
 0x6d7   : > { %1003 = vmatpush.msra.mxu1 %v976_v25 }
 0x6dc   : > { %v1316_v52 = vpop.eup %1315 }
 0x6dd   : > { %v833_v57 = vmul.f32 %v1316_v52, %v1310_v41 }
 0x6e8   : > { %v861_v53 = vpop.permute.xlu0 %860 }
 0x6e9   : > { %881 = vmatpush.msra.mxu0 %v861_v53 }
 0x6ea   : > { %1186 = vmatmul.msk.f32.vlgmr.msra.gmra.mxu0 %vm278_vm9, %v833_v57 }
 0x6ec   : > { %v721_v54 = vpop.f32.mrf.mxu1 }
 0x6ed   : > { %1180 = vmatmul.msk.f32.gmra.mxu2 %vm278_vm9, %v721_v54 }
 0x74d   : > { %v857_v55 = vpop.f32.mrf.mxu1 }
 0x74e   : > { %1187 = vmatmul.msk.f32.vlgmr.msra.gmra.mxu3 %vm278_vm9, %v857_v55  ;;  %v1040_v55 = vld [vmem:[%s1578_s29 + $0xb8] sm:$0xff] }
 0x74f   : > { %1051 = vmatpush.msrb.mxu2 %v1040_v55 }
 0x767   : > { %v883_v56 = vpop.f32.mrf.mxu0 }
 0x768   : > { %1188 = vmatmul.msk.f32.gmra.mxu3 %vm278_vm9, %v883_v56  ;;  %v1039_v56 = vld [vmem:[%s1578_s29 + $0xb0] sm:$0xff] }
 0x769   : > { %1052 = vmatpush.msrb.mxu2 %v1039_v56 }
 0x76b   : > { %1053 = vmatpush.msrb.mxu2 %v1038_v58 }
 0x770   : > { %v751_v5 = vpop.f32.mrf.mxu2 }
 0x771   : > { %v755_v7 = vadd.f32 %v751_v5, %v592_v6  ;;  %v1031_v5 = vld [vmem:[%s1578_s29 + $0x70] sm:$0xff]  ;;  %v1030_v6 = vld [vmem:[%s1578_s29 + $0x68] sm:$0xff] }
 0x7d1   : > { %v910_v61 = vpop.f32.mrf.mxu3 }
 0x7d2   : > { %v916_v62 = vadd.f32 %v910_v61, %v754_v60  ;;  %v1037_v60 = vld [vmem:[%s1578_s29 + $0xa0] sm:$0xff]  ;;  %v1036_v61 = vld [vmem:[%s1578_s29 + $0x98] sm:$0xff] }
 0x7d3   : > { %1054 = vmatpush.msrb.mxu2 %v1037_v60 }
 0x7d4   : > { %v918_v0 = vadd.f32 %v916_v62, %v1586_v2  ;;  %v1035_v62 = vld [vmem:[%s1578_s29 + $0x90] sm:$0xff] }
 0x7d5   : > { %1055 = vmatpush.msrb.mxu2 %v1036_v61 }
 0x7d6   : > { %v1706_v1 = vadd.f32 %v1274_v63, %v918_v0  ;;  %v1033_v0 = vld [vmem:[%s1578_s29 + $0x80] sm:$0xff] }
 0x7d7   : > { %1056 = vmatpush.msrb.mxu2 %v1035_v62 }
 0x7d8   : > { %v926_v3 = vsel %vm182_vm1, %v1706_v1, 0.0 }
 0x7d9   : > { %927 = vadd.xlane.f32.xlu1 %v926_v3  ;;  %v1032_v3 = vld [vmem:[%s1578_s29 + $0x78] sm:$0xff] }
 0x7eb   : > { %v913_v8 = vpop.f32.mrf.mxu3 }
 0x7ec   : > { %v917_v9 = vadd.f32 %v913_v8, %v755_v7  ;;  %v1029_v7 = vld [vmem:[%s1578_s29 + $0x60] sm:$0xff] }
 0x7ed   : > { %v1277_v8 = vld [vmem:[%s1578_s29 + $0xe6] ss:$0 sm:$0xff] }
 0x7ee   : > { %v919_v10 = vadd.f32 %v917_v9, %v1590_v4 }
 0x7f0   : > { %v1713_v11 = vadd.f32 %v1274_v63, %v919_v10  ;;  %v1034_v63 = vld [vmem:[%s1578_s29 + $0x88] sm:$0xff] }
 0x7f1   : > { %1057 = vmatpush.msrb.mxu2 %v1034_v63 }
 0x7f2   : > { %v929_v2 = vsel %vm182_vm1, %v1713_v11, 0.0 }
 0x7f3   : > { %930 = vadd.xlane.f32.xlu2 %v929_v2  ;;  %1058 = vmatpush.msrb.mxu2 %v1033_v0 }
 0x7f5   : > { %1059 = vmatpush.msrb.mxu2 %v1032_v3 }
 0x7f7   : > { %1060 = vmatpush.msrb.mxu2 %v1031_v5 }
 0x7f9   : > { %1061 = vmatpush.msrb.mxu2 %v1030_v6 }
 0x7fb   : > { %1062 = vmatpush.msrb.mxu2 %v1029_v7 }
 0x84c   : > { %v928_v13 = vpop.xlane.xlu1 %927 }
 0x84d   : > { %v932_v14 = vmul.f32 %v928_v13, %v1594_v12 }
 0x84f   : > { %v934_v15 = vsub.f32 %v1706_v1, %v932_v14 }
 0x851   : > { %v936_v16 = vmul.f32 %v934_v15, %v934_v15 }
 0x853   : > { %v938_v17 = vsel %vm182_vm1, %v936_v16, 0.0 }
 0x854   : > { %939 = vadd.xlane.f32.xlu0 %v938_v17 }
 0x866   : > { %v931_v4 = vpop.xlane.xlu2 %930 }
 0x867   : > { %v933_v18 = vmul.f32 %v931_v4, %v1594_v12 }
 0x869   : > { %v935_v19 = vsub.f32 %v1713_v11, %v933_v18 }
 0x86b   : > { %v937_v20 = vmul.f32 %v935_v19, %v935_v19 }
 0x86d   : > { %v941_v21 = vsel %vm182_vm1, %v937_v20, 0.0 }
 0x86e   : > { %942 = vadd.xlane.f32.xlu1 %v941_v21 }
 0x8c7   : > { %v940_v26 = vpop.xlane.xlu0 %939 }
 0x8c8   : > { %v944_v27 = vmul.f32 %v940_v26, %v1594_v12 }
 0x8ca   : > { %v946_v28 = vadd.f32 1e-05, %v944_v27 }
 0x8cc   : > { %1317 = vrsqrt.f32 %v946_v28  ;;  %vm954_vm11 = vweird.f32 %v946_v28 }
 0x8d2   : > { %v1318_v29 = vpop.eup %1317 }
 0x8d3   : > { %v949_v30 = vmul.f32 %v1318_v29, %v946_v28  ;;  %vm955_vm10 = vweird.f32 %v1318_v29 }
 0x8d4   : > { %vm956_vm12 = vmor %vm954_vm11, %vm955_vm10 }
 0x8d5   : > { %v950_v31 = vmul.f32 %v1318_v29, %v949_v30 }
 0x8d7   : > { %v951_v32 = vmul.f32 0.5, %v950_v31  ;;  %v1278_v31 = vld [vmem:[%s1578_s29 + $0xe7] ss:$0 sm:$0xff] }
 0x8d9   : > { %v952_v33 = vsub.f32 1.5, %v951_v32 }
 0x8db   : > { %v953_v34 = vmul.f32 %v1318_v29, %v952_v33 }
 0x8dd   : > { %v957_v36 = vsel %vm956_vm12, %v1318_v29, %v953_v34 }
 0x8de   : > { %v968_v37 = vmul.f32 %v957_v36, %v934_v15 }
 0x8e0   : > { %v971_v41 = vmul.f32 %v1275_v35, %v968_v37 }
 0x8e1   : > { %v943_v43 = vpop.xlane.xlu1 %942 }
 0x8e2   : > { %v945_v44 = vmul.f32 %v943_v43, %v1594_v12  ;;  %v974_v45 = vadd.f32 %v1276_v38, %v971_v41 }
 0x8e4   : > { %v947_v46 = vadd.f32 1e-05, %v945_v44  ;;  %1189 = vmatmul.msk.f32.vlgmr.msra.gmra.mxu1 %vm182_vm1, %v974_v45 }
 0x8e6   : > { %1319 = vrsqrt.f32 %v947_v46  ;;  %vm964_vm14 = vweird.f32 %v947_v46 }
 0x8ec   : > { %v1320_v47 = vpop.eup %1319 }
 0x8ed   : > { %v959_v48 = vmul.f32 %v1320_v47, %v947_v46  ;;  %vm965_vm13 = vweird.f32 %v1320_v47 }
 0x8ee   : > { %vm966_vm15 = vmor %vm964_vm14, %vm965_vm13 }
 0x8ef   : > { %v960_v49 = vmul.f32 %v1320_v47, %v959_v48 }
 0x8f1   : > { %v961_v50 = vmul.f32 0.5, %v960_v49 }
 0x8f3   : > { %v962_v51 = vsub.f32 1.5, %v961_v50 }
 0x8f5   : > { %v963_v52 = vmul.f32 %v1320_v47, %v962_v51 }
 0x8f7   : > { %v967_v12 = vsel %vm966_vm15, %v1320_v47, %v963_v52 }
 0x8f8   : > { %v969_v57 = vmul.f32 %v967_v12, %v935_v19 }
 0x8fa   : > { %v972_v53 = vmul.f32 %v1275_v35, %v969_v57 }
 0x8fc   : > { %v975_v54 = vadd.f32 %v1276_v38, %v972_v53 }
 0x8fe   : > { %1190 = vmatmul.msk.f32.gmra.mxu1 %vm182_vm1, %v975_v54 }
 0x961   : > { %v1005_v9 = vpop.f32.mrf.mxu1 }
 0x962   : > { %v1006_v10 = vadd.f32 %v1277_v8, %v1005_v9 }
 0x964   : > { %v1011_v2 = vmul.f32 %v1006_v10, %v1006_v10 }
 0x966   : > { %v1013_v13 = vmul.f32 %v1011_v2, %v1006_v10 }
 0x968   : > { %v1015_v14 = vmul.f32 0.044715, %v1013_v13 }
 0x96a   : > { %v1017_v15 = vadd.f32 %v1015_v14, %v1006_v10 }
 0x96c   : > { %v1019_v16 = vmul.f32 0.7978846, %v1017_v15 }
 0x96e   : > { %1321 = vtanh.f32 %v1019_v16 }
 0x974   : > { %v1322_v17 = vpop.eup %1321 }
 0x975   : > { %v1023_v4 = vadd.f32 1.0, %v1322_v17 }
 0x977   : > { %v1025_v18 = vmul.f32 0.5, %v1023_v4 }
 0x979   : > { %v1027_v19 = vmul.f32 %v1025_v18, %v1006_v10 }
 0x97b   : > { %v1008_v20 = vpop.f32.mrf.mxu1  ;;  %1063 = vmatmul.f32.vlgmr.msrb.gmra.mxu2 %v1027_v19 }
 0x97c   : > { %v1009_v21 = vadd.f32 %v1277_v8, %v1008_v20 }
 0x97e   : > { %v1012_v22 = vmul.f32 %v1009_v21, %v1009_v21 }
 0x980   : > { %v1014_v23 = vmul.f32 %v1012_v22, %v1009_v21 }
 0x982   : > { %v1016_v24 = vmul.f32 0.044715, %v1014_v23 }
 0x984   : > { %v1018_v25 = vadd.f32 %v1016_v24, %v1009_v21 }
 0x986   : > { %v1020_v26 = vmul.f32 0.7978846, %v1018_v25 }
 0x988   : > { %1323 = vtanh.f32 %v1020_v26 }
 0x98e   : > { %v1324_v27 = vpop.eup %1323 }
 0x98f   : > { %v1024_v28 = vadd.f32 1.0, %v1324_v27 }
 0x991   : > { %v1026_v29 = vmul.f32 0.5, %v1024_v28 }
 0x993   : > { %v1028_v30 = vmul.f32 %v1026_v29, %v1009_v21 }
 0x995   : > { %1066 = vmatmul.f32.gmra.mxu2 %v1028_v30 }
 0x9fe   : > { %v1064_v32 = vpop.f32.mrf.mxu2 }
 0x9ff   : > { %v1065_v33 = vadd.f32 %v1278_v31, %v1064_v32 }
 0xa01   : > { %v1070_v34 = vadd.f32 %v1065_v33, %v1706_v1 }
 0xa03   : > { %1072 = vst.msk [vmem:[#allocation7] sm:$0xff] %vm182_vm1, %v1070_v34 }
 0xa18   : > { %v1067_v35 = vpop.f32.mrf.mxu2 }
 0xa19   : > { %v1068_v36 = vadd.f32 %v1278_v31, %v1067_v35 }
 0xa1b   : > { %v1071_v37 = vadd.f32 %v1068_v36, %v1713_v11 }
 0xa1d   : > { %1073 = vst.msk [vmem:[#allocation7 + $0x8] sm:$0xff] %vm182_vm1, %v1071_v37 }
 0xa1e   : > { %1205 = dma.vmem_to_hbm [thread:$0]  (%p1219_p1), %s1080_s15, 256, %s1082_s17, [#allocation4], %s1473_s19, %s1473_s19, %s1474_s20  }
 0xa1f   : > { %1438 = dma.done.wait (%p1219_p1), [#allocation4], 256  }
 0xa20   : > { %1440 = vsyncadd (%p1219_p1), [#allocation4], 4294967040 }
 0xa21 PF: > { %p14_p4 = scmp.ge.s32.totalorder %s1534_s21, 4   ;;  %s1778_s9 = smov %s1447_s10 }
 0xa22   : > { %s1779_s10 = smov %s1451_s11  ;;  %s1780_s11 = smov %s1547_s26 }
 0xa23   : > { %s1781_s12 = smov %s1534_s21  ;;  %16 = sbr.rel (!%p14_p4) target bundleno = 5 (0x5), region = 74 }
 0xa28   :  { %1098 = vsyncpa [#allocation3], 1 }
 0xa29   :  { %1100 = vsyncpa [#allocation3 + $0x1], 1 }
 0xa2a   :  { %1101 = vsyncpa [#allocation6], 1 }
 0xa2b   :  { %1103 = vsyncpa [#allocation6 + $0x1], 1 }
 0xa2c   :  { %1104 = vsyncpa [#allocation4], 1 }
 0xa2d   :  { %1106 = vsyncpa [#allocation4 + $0x1], 1 }

</bundles_post_ra>
